<compile_context>
chip_gen: v5e
topology: v5e:2x2
jax: 0.10.0
libtpu: 0.0.40
codegen_flags: <defaults>
</compile_context>

<pallas_src>
import functools

import jax
import jax.numpy as jnp
from jax.experimental import pallas as pl
from jax.experimental.pallas import tpu as pltpu

LANES = 128
MAX_BLOCK_ROWS = 4096      # (4096, 128) fp32 = 2 MiB per buffer
ROW_ALIGN = 32             # keep int8 mask tiles (32, 128) whole
TARGET_BLOCKS = 8          # aim for >= ~8 grid steps so v7x's 2 TCs both get work


def _cdiv(a, b):
    return -(-a // b)


def _round_up(x, m):
    return ((x + m - 1) // m) * m


def _sparse_dropout_kernel(vals_ref, out_vals_ref, out_mask_ref, *,
                           seed_mix, threshold32, scale, block_elems):
    """Elementwise dropout on the sparse-tensor values.

    vals_ref     : (block_rows, 128) fp32 tile of values
    out_vals_ref : (block_rows, 128) fp32 tile of scaled / zeroed values
    out_mask_ref : (block_rows, 128) int8 tile (1 = kept, 0 = dropped)
    """
    blk = pl.program_id(0)
    shape = vals_ref.shape

    # Global element id of every lane in this block (tiling-invariant).
    # Note: int32, so per-element uniqueness wraps only for nnz >= 2^31
    # (statistically harmless for a hash input).  On a ragged last block the
    # out-of-bounds rows are computed on garbage but their writes are masked.
    r = jax.lax.broadcasted_iota(jnp.int32, shape, 0)
    c = jax.lax.broadcasted_iota(jnp.int32, shape, 1)
    gid = blk * block_elems + r * LANES + c

    # lowbias32 integer hash -> well-mixed 32 random bits per element.
    x = gid.astype(jnp.uint32) + jnp.uint32(seed_mix)
    x = x ^ (x >> 16)
    x = x * jnp.uint32(0x7FEB352D)
    x = x ^ (x >> 15)
    x = x * jnp.uint32(0x846CA68B)
    x = x ^ (x >> 16)

    # Raw 32-bit domain threshold compare (torch: keep <=> rand >= dprob).
    keep = x >= jnp.uint32(threshold32)

    out_vals_ref[...] = jnp.where(keep, vals_ref[...] * jnp.float32(scale),
                                  jnp.float32(0.0))
    out_mask_ref[...] = keep.astype(jnp.int8)


def sparse_dropout(indices, values, seed, dprob=0.5):
    """Pallas SparseDropout.

    indices: int32 [2, nnz]   (COO row/col indices, passed through)
    values : fp32  [nnz]
    seed   : python int PRNG seed
    returns (indices, new_values fp32 [nnz], keep_mask int8 [nnz]; 1 = kept)
    """
    kprob = 1.0 - dprob
    values = values.astype(jnp.float32)
    nnz = values.shape[0]

    if dprob >= 1.0:
        # torch keeps nothing (and 1/kprob would be inf): all zeros, empty mask.
        return indices, jnp.zeros((nnz,), jnp.float32), jnp.zeros((nnz,), jnp.int8)

    rows = _cdiv(nnz, LANES)
    pad = rows * LANES - nnz
    # Only pad to the next 128-lane multiple; callers with 128-aligned nnz pay
    # zero extra HBM traffic in the wrapper (reshape is layout-free).
    vals_padded = values if pad == 0 else jnp.pad(values, (0, pad))
    vals_2d = vals_padded.reshape(rows, LANES)

    # Biggest block that fits comfortably while keeping >= ~TARGET_BLOCKS grid
    # steps (v7x megacore) and 32-row alignment (int8 tile).  Pallas masks the
    # ragged last block, so rows need not be a multiple of block_rows.
    block_rows = min(rows, MAX_BLOCK_ROWS,
                     _round_up(max(1, _cdiv(rows, TARGET_BLOCKS)), ROW_ALIGN))
    n_blocks = _cdiv(rows, block_rows)

    seed_mix = (int(seed) * 0x9E3779B9 + 0x85EBCA6B) & 0xFFFFFFFF
    threshold32 = min(max(int(round(dprob * 4294967296.0)), 0), 4294967295)
    kernel = functools.partial(
        _sparse_dropout_kernel,
        seed_mix=seed_mix,
        threshold32=threshold32,
        scale=1.0 / kprob,
        block_elems=block_rows * LANES,
    )

    out_vals_2d, out_mask_2d = pl.pallas_call(
        kernel,
        out_shape=(
            jax.ShapeDtypeStruct((rows, LANES), jnp.float32),
            jax.ShapeDtypeStruct((rows, LANES), jnp.int8),
        ),
        grid=(n_blocks,),
        in_specs=[pl.BlockSpec((block_rows, LANES), lambda b: (b, 0))],
        out_specs=(
            pl.BlockSpec((block_rows, LANES), lambda b: (b, 0)),
            pl.BlockSpec((block_rows, LANES), lambda b: (b, 0)),
        ),
        compiler_params=pltpu.CompilerParams(
            dimension_semantics=("parallel",)),
    )(vals_2d)

    new_values = out_vals_2d.reshape(-1)
    keep_mask = out_mask_2d.reshape(-1)
    if pad != 0:
        new_values = new_values[:nnz]
        keep_mask = keep_mask[:nnz]
    # TODO(synk): torch's `indices[:, mask]` / `values[mask]` compaction is a
    # dynamic-shape gather with no Pallas/JAX equivalent; we return the full
    # nnz-sized int8 mask + scaled/zeroed values (equivalent sparse result).
    return indices, new_values, keep_mask


if __name__ == "__main__":
    key = jax.random.PRNGKey(0)
    k_row, k_col, k_val, k_big, k_rag = jax.random.split(key, 5)

    # 1) Small, lane-unaligned case: dense shape (16, 16), nnz = 300 COO entries.
    dense_shape = (16, 16)
    nnz = 300
    rows_idx = jax.random.randint(k_row, (nnz,), 0, dense_shape[0], dtype=jnp.int32)
    cols_idx = jax.random.randint(k_col, (nnz,), 0, dense_shape[1], dtype=jnp.int32)
    indices = jnp.stack([rows_idx, cols_idx], axis=0)               # [2, nnz]
    values = jax.random.normal(k_val, (nnz,), jnp.float32)          # [nnz]

    dprob = 0.5
    out_indices, out_values, keep_mask = sparse_dropout(indices, values, seed=42, dprob=dprob)
    jax.block_until_ready(out_values)
    jax.block_until_ready(keep_mask)

    keep_b = keep_mask.astype(jnp.bool_)
    expected = jnp.where(keep_b, values * jnp.float32(1.0 / (1.0 - dprob)), 0.0)
    assert bool(jnp.all(out_values == expected)), "value check failed (small)"
    assert out_indices.shape == (2, nnz)
    assert out_values.shape == (nnz,) and keep_mask.shape == (nnz,)

    # 2) Lane-aligned, multi-block case (copy-free wrapper path, 8 grid blocks).
    big_nnz = 131072
    big_vals = jax.random.normal(k_big, (big_nnz,), jnp.float32)
    big_idx = jnp.zeros((2, big_nnz), jnp.int32)
    big_dprob = 0.25
    _, big_out, big_mask = sparse_dropout(big_idx, big_vals, seed=7, dprob=big_dprob)
    jax.block_until_ready(big_out)
    jax.block_until_ready(big_mask)

    big_keep = big_mask.astype(jnp.bool_)
    big_expected = jnp.where(big_keep, big_vals * jnp.float32(1.0 / (1.0 - big_dprob)), 0.0)
    assert bool(jnp.all(big_out == big_expected)), "value check failed (aligned)"
    keep_rate = float(jnp.mean(big_mask.astype(jnp.float32)))
    assert abs(keep_rate - (1.0 - big_dprob)) < 0.02, f"keep rate {keep_rate}"

    # 3) Unaligned multi-block case: exercises the ragged last block masking.
    rag_nnz = 50_000
    rag_vals = jax.random.normal(k_rag, (rag_nnz,), jnp.float32)
    rag_idx = jnp.zeros((2, rag_nnz), jnp.int32)
    _, rag_out, rag_mask = sparse_dropout(rag_idx, rag_vals, seed=11, dprob=0.5)
    jax.block_until_ready(rag_out)
    jax.block_until_ready(rag_mask)

    rag_keep = rag_mask.astype(jnp.bool_)
    rag_expected = jnp.where(rag_keep, rag_vals * jnp.float32(2.0), 0.0)
    assert bool(jnp.all(rag_out == rag_expected)), "value check failed (ragged)"
    rag_rate = float(jnp.mean(rag_mask.astype(jnp.float32)))
    assert abs(rag_rate - 0.5) < 0.02, f"keep rate {rag_rate}"

    # 4) dprob = 1.0 edge case (handled host-side, no divide-by-zero).
    _, z_vals, z_mask = sparse_dropout(indices, values, seed=1, dprob=1.0)
    jax.block_until_ready(z_vals)
    assert bool(jnp.all(z_vals == 0.0)) and bool(jnp.all(z_mask == 0))

    print("KERNEL_OK")
</pallas_src>

<mosaic_0001>
module attributes {stable_mosaic.version = 11 : i64} {
  func.func @_sparse_dropout_kernel(%arg0: i32, %arg1: memref<3x128xf32, #tpu.memory_space<vmem>>, %arg2: memref<3x128xf32, #tpu.memory_space<vmem>>, %arg3: memref<3x128xi8, #tpu.memory_space<vmem>>) attributes {dimension_semantics = [#tpu.dimension_semantics<parallel>], iteration_bounds = array<i64: 1>, scalar_prefetch = 0 : i64, scratch_operands = 0 : i64, tpu.core_type = #tpu.core_type<tc>, window_params = [{transform_indices = @transform_0, window_bounds = array<i64: 3, 128>}, {transform_indices = @transform_1, window_bounds = array<i64: 3, 128>}, {transform_indices = @transform_2, window_bounds = array<i64: 3, 128>}]} {
    %0 = tpu.iota {dimensions = array<i32: 0>} : vector<3x128xi32>
    %1 = tpu.iota {dimensions = array<i32: 1>} : vector<3x128xi32>
    %c384_i32 = arith.constant 384 : i32
    %2 = arith.muli %arg0, %c384_i32 : i32
    %c128_i32 = arith.constant 128 : i32
    %3 = vector.broadcast %c128_i32 : i32 to vector<3x128xi32>
    %4 = arith.muli %0, %3 : vector<3x128xi32>
    %5 = vector.broadcast %2 : i32 to vector<3x128xi32>
    %6 = arith.addi %5, %4 : vector<3x128xi32>
    %7 = arith.addi %6, %1 : vector<3x128xi32>
    %c2063975109_i32 = arith.constant 2063975109 : i32
    %8 = vector.broadcast %c2063975109_i32 : i32 to vector<3x128xi32>
    %9 = arith.addi %7, %8 : vector<3x128xi32>
    %c16_i32 = arith.constant 16 : i32
    %10 = vector.broadcast %c16_i32 : i32 to vector<3x128xi32>
    %11 = arith.shrui %9, %10 : vector<3x128xi32>
    %12 = arith.xori %9, %11 : vector<3x128xi32>
    %c2146121005_i32 = arith.constant 2146121005 : i32
    %13 = vector.broadcast %c2146121005_i32 : i32 to vector<3x128xi32>
    %14 = arith.muli %12, %13 : vector<3x128xi32>
    %c15_i32 = arith.constant 15 : i32
    %15 = vector.broadcast %c15_i32 : i32 to vector<3x128xi32>
    %16 = arith.shrui %14, %15 : vector<3x128xi32>
    %17 = arith.xori %14, %16 : vector<3x128xi32>
    %c-2073254261_i32 = arith.constant -2073254261 : i32
    %18 = vector.broadcast %c-2073254261_i32 : i32 to vector<3x128xi32>
    %19 = arith.muli %17, %18 : vector<3x128xi32>
    %c16_i32_0 = arith.constant 16 : i32
    %20 = vector.broadcast %c16_i32_0 : i32 to vector<3x128xi32>
    %21 = arith.shrui %19, %20 : vector<3x128xi32>
    %22 = arith.xori %19, %21 : vector<3x128xi32>
    %c-2147483648_i32 = arith.constant -2147483648 : i32
    %23 = vector.broadcast %c-2147483648_i32 : i32 to vector<3x128xi32>
    %24 = arith.cmpi uge, %22, %23 : vector<3x128xi32>
    %c0 = arith.constant 0 : index
    %c0_1 = arith.constant 0 : index
    %25 = vector.load %arg1[%c0, %c0_1] : memref<3x128xf32, #tpu.memory_space<vmem>>, vector<3x128xf32>
    %cst = arith.constant 2.000000e+00 : f32
    %26 = vector.broadcast %cst : f32 to vector<3x128xf32>
    %27 = arith.mulf %25, %26 : vector<3x128xf32>
    %cst_2 = arith.constant 0.000000e+00 : f32
    %28 = vector.broadcast %cst_2 : f32 to vector<3x128xf32>
    %29 = arith.select %24, %27, %28 : vector<3x128xi1>, vector<3x128xf32>
    %c0_3 = arith.constant 0 : index
    %c0_4 = arith.constant 0 : index
    %30 = vector.load %arg2[%c0_3, %c0_4] : memref<3x128xf32, #tpu.memory_space<vmem>>, vector<3x128xf32>
    tpu.vector_store %arg2[%c0_3, %c0_4], %29 {strides = array<i32>} : memref<3x128xf32, #tpu.memory_space<vmem>>, vector<3x128xf32>,
    %31 = arith.extui %24 : vector<3x128xi1> to vector<3x128xi8>
    %c0_5 = arith.constant 0 : index
    %c0_6 = arith.constant 0 : index
    %32 = vector.load %arg3[%c0_5, %c0_6] : memref<3x128xi8, #tpu.memory_space<vmem>>, vector<3x128xi8>
    tpu.vector_store %arg3[%c0_5, %c0_6], %31 {strides = array<i32>} : memref<3x128xi8, #tpu.memory_space<vmem>>, vector<3x128xi8>,
    return
  }
  func.func @transform_0(%arg0: i32) -> (i32, i32) {
    %c0_i32 = arith.constant 0 : i32
    %c0_i32_0 = arith.constant 0 : i32
    return %arg0, %c0_i32 : i32, i32
  }
  func.func @transform_1(%arg0: i32) -> (i32, i32) {
    %c0_i32 = arith.constant 0 : i32
    %c0_i32_0 = arith.constant 0 : i32
    return %arg0, %c0_i32 : i32, i32
  }
  func.func @transform_2(%arg0: i32) -> (i32, i32) {
    %c0_i32 = arith.constant 0 : i32
    %c0_i32_0 = arith.constant 0 : i32
    return %arg0, %c0_i32 : i32, i32
  }
}

</mosaic_0001>

<bundles_post_ra>
// kernel: tpu_custom_call.1
= control target key start
LH: loop header
LB: loop body
LE: loop exit
PB: predicated region body
PF: predicated region fallthrough
CT: control target
= control target key end

     0   :  { %8 = vsyncpa [#allocation3], 0  ;;  %s209_s0 = inlined_call_operand.hbm [shape: f32[3,128], index: 0, kind: input, shape index: {}]   ;;  %s210_s1 = inlined_call_operand.hbm [shape: f32[3,128], index: 1, kind: output, shape index: {0}]   ;;  %s211_s2 = inlined_call_operand.hbm [shape: s8[3,128], index: 2, kind: output, shape index: {1}]  }
   0x1   :  { %9 = vsyncpa [#allocation4], 0 }
   0x2   :  { %10 = vsyncpa [#allocation7], 0  ;;  %s16_s11 = sshll.u32 %s209_s0, 4  ;;  %s181_s12 = smov [#allocation2]   ;;  %s17_s11 = int_to_ptr.hbm [resolvable:$true] %s16_s11 }
   0x3   :  { %s18_s13 = sshll.u32 %s181_s12, 4  ;;  %s19_s13 = int_to_ptr.vmem [resolvable:$true] %s18_s13 }
   0x4   :  { %21 = dma.hbm_to_vmem [thread:$0]  %s17_s11, 64, %s19_s13, [#allocation3]  }
   0x5   :  { %175 = dma.done.wait [#allocation3], 64  }
   0x6   :  { %176 = vsyncadd [#allocation3], 4294967232  ;;  %v28_v0 = vlaneseq  ;;  %v49_v13 = vld [vmem:[#allocation2] sm:$0x7]  ;;  %s182_s0 = smov [#allocation5]   ;;  %s72_s17 = sshll.u32 %s210_s1, 4  ;;  %s73_s17 = int_to_ptr.hbm [resolvable:$true] %s72_s17 }
   0x7   :  { %v50_v15 = vmul.f32 2.0, %v49_v13  ;;  %s70_s14 = sshll.u32 %s182_s0, 4  ;;  %vm59_vm2 = vcmask 1040384   ;;  %vm60_vm3 = vsmask.f32 512  ;;  %v183_v18 = vmov 0   ;;  %s71_s14 = int_to_ptr.vmem [resolvable:$true] %s70_s14 }
   0x8   :  { %v29_v1 = vshrl.u32 %v28_v0, 7  ;;  %v31_v2 = vand.u32 127, %v28_v0  ;;  %s184_s18 = smov [#allocation6]   ;;  %s83_s22 = sshll.u32 %s211_s2, 4  ;;  %vm61_vm4 = vmand %vm59_vm2, %vm60_vm3  ;;  %v62_v21 = vld [vmem:[#allocation6] sm:$0x1]  ;;  %s84_s22 = int_to_ptr.hbm [resolvable:$true] %s83_s22 }
   0x9   :  { %s81_s19 = sshll.u32 %s184_s18, 4  ;;  %s82_s19 = int_to_ptr.vmem [resolvable:$true] %s81_s19 }
   0xa   :  { %v33_v3 = vmul.u32 128, %v29_v1 }
   0xc   :  { %v36_v4 = vadd.s32 %v33_v3, %v31_v2 }
   0xe   :  { %v37_v5 = vadd.s32 2063975109, %v36_v4 }
  0x10   :  { %v38_v6 = vshrl.u32 %v37_v5, 16 }
  0x12   :  { %v39_v7 = vxor.u32 %v38_v6, %v37_v5 }
  0x14   :  { %v40_v8 = vmul.u32 2146121005, %v39_v7 }
  0x16   :  { %v41_v9 = vshrl.u32 %v40_v8, 15 }
  0x18   :  { %v42_v10 = vxor.u32 %v41_v9, %v40_v8 }
  0x1a   :  { %v43_v11 = vmul.u32 2221713035, %v42_v10 }
  0x1c   :  { %v44_v12 = vshrl.u32 %v43_v11, 16 }
  0x1e   :  { %v45_v14 = vxor.u32 %v44_v12, %v43_v11 }
  0x20   :  { %v98_v16 = vxor.u32 2147483648, %v45_v14 }
  0x22   :  { %vm48_vm0 = vcmp.ge.s32.totalorder %v98_v16, 0 }
  0x23   :  { %v51_v17 = vsel %vm48_vm0, %v50_v15, 0.0  ;;  %vm53_vm1 = vmpackc.low %vm48_vm0, %vm48_vm0 }
  0x24   :  { %52 = vst [vmem:[#allocation5] sm:$0x7] %v51_v17  ;;  %v54_v19 = vsel %vm53_vm1, 16711935, %v183_v18 }
  0x25   :  { %v56_v20 = vpack.c.b8 %v54_v19, %v54_v19  ;;  %75 = dma.vmem_to_hbm [thread:$0]  %s71_s14, 64, %s73_s17, [#allocation4]  }
  0x27   :  { %vm57_vm5 = vnez %v56_v20 }
  0x28   :  { %v58_v22 = vsel %vm57_vm5, 16843009, %v183_v18 }
  0x29   :  { %v63_v23 = vsel %vm61_vm4, %v58_v22, %v62_v21 }
  0x2a   :  { %64 = vst [vmem:[#allocation6] sm:$0x1] %v63_v23 }
  0x2b   :  { %86 = dma.vmem_to_hbm [thread:$0]  %s82_s19, 16, %s84_s22, [#allocation7]  }
  0x2c   :  { %177 = dma.done.wait [#allocation4], 64  }
  0x2d   :  { %178 = vsyncadd [#allocation4], 4294967232 }
  0x2e   :  { %179 = dma.done.wait [#allocation7], 16  }
  0x2f   :  { %180 = vsyncadd [#allocation7], 4294967280 }
  0x30   :  { %95 = vsyncpa [#allocation3], 1 }
  0x31   :  { %96 = vsyncpa [#allocation4], 1 }
  0x32   :  { %97 = vsyncpa [#allocation7], 1 }

</bundles_post_ra>
